<compile_context>
chip_gen: v5e
topology: v5e:2x2
jax: 0.10.0
libtpu: 0.0.40
codegen_flags: <defaults>
</compile_context>

<pallas_src>
import functools

import jax
import jax.numpy as jnp
from jax.experimental import pallas as pl
from jax.experimental.pallas import tpu as pltpu

IN_F = 2      # input features
HID_F = 10    # hidden features
OUT_F = 2     # output features

# Flat parameter packing: [W1 (10*2), b1 (10), W2 (2*10), b2 (2)]
W1_OFF = 0
B1_OFF = W1_OFF + HID_F * IN_F
W2_OFF = B1_OFF + HID_F
B2_OFF = W2_OFF + OUT_F * HID_F
N_PARAMS = B2_OFF + OUT_F          # 52

LANES = 128                        # vreg lane width


def mlp_kernel(x_ref, p_ref, o_ref):
    """x_ref: (IN_F, S, 128) VMEM tile; p_ref: (52,) f32 SMEM; o_ref: (OUT_F, S, 128) VMEM."""
    # Hoist all scalar parameter reads (each read exactly once).
    p = [p_ref[i] for i in range(N_PARAMS)]

    # Dense (S, 128) feature rows, batch on sublanes+lanes.
    x_rows = [x_ref[k] for k in range(IN_F)]

    # Layer 1: h[j] = relu(sum_k W1[j,k] * x[k] + b1[j])   (K = 2, VPU broadcast-FMA)
    h_rows = []
    for j in range(HID_F):
        hj = x_rows[0] * p[W1_OFF + j * IN_F + 0]
        for k in range(1, IN_F):
            hj = hj + x_rows[k] * p[W1_OFF + j * IN_F + k]
        h_rows.append(jnp.maximum(hj + p[B1_OFF + j], 0.0))

    # Layer 2: y[i] = sum_j W2[i,j] * h[j] + b2[i]          (K = 10, VPU broadcast-FMA)
    # Direct per-row stores (no sublane-axis concatenate before the store).
    for i in range(OUT_F):
        yi = h_rows[0] * p[W2_OFF + i * HID_F + 0]
        for j in range(1, HID_F):
            yi = yi + h_rows[j] * p[W2_OFF + i * HID_F + j]
        o_ref[i] = (yi + p[B2_OFF + i]).astype(o_ref.dtype)


@functools.partial(jax.jit, static_argnames=("max_sublanes",))
def net_forward(x, w1, b1, w2, b2, *, max_sublanes=256):
    """Forward pass of Net.  x: (N, 2) f32; params in PyTorch layout:
    w1 (10, 2), b1 (10,), w2 (2, 10), b2 (2,).  Returns (N, 2) f32."""
    N = x.shape[0]

    # Chunking: each grid step handles S sublanes x 128 lanes = S*128 batch elems.
    # S is a multiple of 8; defaults to 256 (32768 elems, ~0.5 MiB in+out f32 per
    # step — well under the 16 MiB v5e / 32 MiB v6e-v7x scoped-VMEM defaults) and
    # shrinks for small batches to avoid excessive padding.
    n_groups = pl.cdiv(N, LANES)                      # 128-wide lane groups needed
    S = min(max_sublanes, 8 * pl.cdiv(n_groups, 8))   # sublanes per block (mult of 8)
    grid = pl.cdiv(n_groups, S)
    n_pad = grid * S * LANES

    # Feature-major, zero-padded, contiguous re-block to (IN_F, n_pad//128, 128).
    x_b = jnp.pad(x.T, ((0, 0), (0, n_pad - N))).reshape(IN_F, n_pad // LANES, LANES)

    params = jnp.concatenate(
        [w1.reshape(-1), b1.reshape(-1), w2.reshape(-1), b2.reshape(-1)]
    ).astype(jnp.float32)

    cost = pl.CostEstimate(
        flops=2 * n_pad * (IN_F * HID_F + HID_F * OUT_F),
        transcendentals=0,
        bytes_accessed=4 * (n_pad * (IN_F + OUT_F) + N_PARAMS),
    )

    out_b = pl.pallas_call(
        mlp_kernel,
        out_shape=jax.ShapeDtypeStruct((OUT_F, n_pad // LANES, LANES), x.dtype),
        grid_spec=pltpu.PrefetchScalarGridSpec(
            num_scalar_prefetch=0,
            grid=(grid,),
            in_specs=[
                # Sublane+lane-dense x tile.
                pl.BlockSpec((IN_F, S, LANES), lambda i: (0, i, 0)),
                # All 52 parameters as one flat SMEM array (scalar reads).
                pl.BlockSpec(memory_space=pltpu.MemorySpace.SMEM),
            ],
            out_specs=pl.BlockSpec((OUT_F, S, LANES), lambda i: (0, i, 0)),
        ),
        compiler_params=pltpu.CompilerParams(
            # Batch axis is independent; multi-step grids (large N) shard across
            # both TensorCores on v7x.  Single-step grids (tiny N) use one TC.
            dimension_semantics=("parallel",),
        ),
        cost_estimate=cost,
    )(x_b, params)

    return out_b.reshape(OUT_F, n_pad)[:, :N].T


def init_params(key):
    """Deterministic init mirroring nn.Linear defaults: U(-1/sqrt(fan_in), 1/sqrt(fan_in))."""
    k1, k2, k3, k4 = jax.random.split(key, 4)
    bound1 = 1.0 / jnp.sqrt(float(IN_F))
    bound2 = 1.0 / jnp.sqrt(float(HID_F))
    w1 = jax.random.uniform(k1, (HID_F, IN_F), jnp.float32, -bound1, bound1)
    b1 = jax.random.uniform(k2, (HID_F,), jnp.float32, -bound1, bound1)
    w2 = jax.random.uniform(k3, (OUT_F, HID_F), jnp.float32, -bound2, bound2)
    b2 = jax.random.uniform(k4, (OUT_F,), jnp.float32, -bound2, bound2)
    return w1, b1, w2, b2


if __name__ == "__main__":
    key = jax.random.PRNGKey(0)
    k_data, k_params = jax.random.split(key)

    # Synthetic data like the original script: two Gaussian clusters in R^2, 100 each.
    n_data = jnp.ones((100, 2), jnp.float32)
    ka, kb = jax.random.split(k_data)
    x1 = 2.0 * n_data + jax.random.normal(ka, (100, 2), jnp.float32)
    x2 = -2.0 * n_data + jax.random.normal(kb, (100, 2), jnp.float32)
    x = jnp.concatenate([x1, x2], axis=0)            # (200, 2)

    w1, b1, w2, b2 = init_params(k_params)

    out = jax.block_until_ready(net_forward(x, w1, b1, w2, b2))

    # Plain-JAX reference (PyTorch layout: y = relu(x @ W1^T + b1) @ W2^T + b2).
    ref = jnp.maximum(x @ w1.T + b1, 0.0) @ w2.T + b2
    assert out.shape == (200, 2)
    assert jnp.allclose(out, ref, atol=1e-5, rtol=1e-5), float(jnp.max(jnp.abs(out - ref)))

    print("KERNEL_OK")
</pallas_src>

<mosaic_0001>
module attributes {stable_mosaic.version = 11 : i64} {
  func.func @mlp_kernel(%arg0: i32, %arg1: memref<2x8x128xf32, #tpu.memory_space<vmem>>, %arg2: memref<52xf32, #tpu.memory_space<smem>>, %arg3: memref<2x8x128xf32, #tpu.memory_space<vmem>>) attributes {dimension_semantics = [#tpu.dimension_semantics<parallel>], iteration_bounds = array<i64: 1>, scalar_prefetch = 0 : i64, scratch_operands = 0 : i64, tpu.core_type = #tpu.core_type<tc>, window_params = [{transform_indices = @transform_0, window_bounds = array<i64: 2, 8, 128>}, {transform_indices = @transform_1, window_bounds = array<i64: 52>}, {transform_indices = @transform_2, window_bounds = array<i64: 2, 8, 128>}]} {
    %c0 = arith.constant 0 : index
    %0 = memref.load %arg2[%c0] : memref<52xf32, #tpu.memory_space<smem>>
    %c1 = arith.constant 1 : index
    %1 = memref.load %arg2[%c1] : memref<52xf32, #tpu.memory_space<smem>>
    %c2 = arith.constant 2 : index
    %2 = memref.load %arg2[%c2] : memref<52xf32, #tpu.memory_space<smem>>
    %c3 = arith.constant 3 : index
    %3 = memref.load %arg2[%c3] : memref<52xf32, #tpu.memory_space<smem>>
    %c4 = arith.constant 4 : index
    %4 = memref.load %arg2[%c4] : memref<52xf32, #tpu.memory_space<smem>>
    %c5 = arith.constant 5 : index
    %5 = memref.load %arg2[%c5] : memref<52xf32, #tpu.memory_space<smem>>
    %c6 = arith.constant 6 : index
    %6 = memref.load %arg2[%c6] : memref<52xf32, #tpu.memory_space<smem>>
    %c7 = arith.constant 7 : index
    %7 = memref.load %arg2[%c7] : memref<52xf32, #tpu.memory_space<smem>>
    %c8 = arith.constant 8 : index
    %8 = memref.load %arg2[%c8] : memref<52xf32, #tpu.memory_space<smem>>
    %c9 = arith.constant 9 : index
    %9 = memref.load %arg2[%c9] : memref<52xf32, #tpu.memory_space<smem>>
    %c10 = arith.constant 10 : index
    %10 = memref.load %arg2[%c10] : memref<52xf32, #tpu.memory_space<smem>>
    %c11 = arith.constant 11 : index
    %11 = memref.load %arg2[%c11] : memref<52xf32, #tpu.memory_space<smem>>
    %c12 = arith.constant 12 : index
    %12 = memref.load %arg2[%c12] : memref<52xf32, #tpu.memory_space<smem>>
    %c13 = arith.constant 13 : index
    %13 = memref.load %arg2[%c13] : memref<52xf32, #tpu.memory_space<smem>>
    %c14 = arith.constant 14 : index
    %14 = memref.load %arg2[%c14] : memref<52xf32, #tpu.memory_space<smem>>
    %c15 = arith.constant 15 : index
    %15 = memref.load %arg2[%c15] : memref<52xf32, #tpu.memory_space<smem>>
    %c16 = arith.constant 16 : index
    %16 = memref.load %arg2[%c16] : memref<52xf32, #tpu.memory_space<smem>>
    %c17 = arith.constant 17 : index
    %17 = memref.load %arg2[%c17] : memref<52xf32, #tpu.memory_space<smem>>
    %c18 = arith.constant 18 : index
    %18 = memref.load %arg2[%c18] : memref<52xf32, #tpu.memory_space<smem>>
    %c19 = arith.constant 19 : index
    %19 = memref.load %arg2[%c19] : memref<52xf32, #tpu.memory_space<smem>>
    %c20 = arith.constant 20 : index
    %20 = memref.load %arg2[%c20] : memref<52xf32, #tpu.memory_space<smem>>
    %c21 = arith.constant 21 : index
    %21 = memref.load %arg2[%c21] : memref<52xf32, #tpu.memory_space<smem>>
    %c22 = arith.constant 22 : index
    %22 = memref.load %arg2[%c22] : memref<52xf32, #tpu.memory_space<smem>>
    %c23 = arith.constant 23 : index
    %23 = memref.load %arg2[%c23] : memref<52xf32, #tpu.memory_space<smem>>
    %c24 = arith.constant 24 : index
    %24 = memref.load %arg2[%c24] : memref<52xf32, #tpu.memory_space<smem>>
    %c25 = arith.constant 25 : index
    %25 = memref.load %arg2[%c25] : memref<52xf32, #tpu.memory_space<smem>>
    %c26 = arith.constant 26 : index
    %26 = memref.load %arg2[%c26] : memref<52xf32, #tpu.memory_space<smem>>
    %c27 = arith.constant 27 : index
    %27 = memref.load %arg2[%c27] : memref<52xf32, #tpu.memory_space<smem>>
    %c28 = arith.constant 28 : index
    %28 = memref.load %arg2[%c28] : memref<52xf32, #tpu.memory_space<smem>>
    %c29 = arith.constant 29 : index
    %29 = memref.load %arg2[%c29] : memref<52xf32, #tpu.memory_space<smem>>
    %c30 = arith.constant 30 : index
    %30 = memref.load %arg2[%c30] : memref<52xf32, #tpu.memory_space<smem>>
    %c31 = arith.constant 31 : index
    %31 = memref.load %arg2[%c31] : memref<52xf32, #tpu.memory_space<smem>>
    %c32 = arith.constant 32 : index
    %32 = memref.load %arg2[%c32] : memref<52xf32, #tpu.memory_space<smem>>
    %c33 = arith.constant 33 : index
    %33 = memref.load %arg2[%c33] : memref<52xf32, #tpu.memory_space<smem>>
    %c34 = arith.constant 34 : index
    %34 = memref.load %arg2[%c34] : memref<52xf32, #tpu.memory_space<smem>>
    %c35 = arith.constant 35 : index
    %35 = memref.load %arg2[%c35] : memref<52xf32, #tpu.memory_space<smem>>
    %c36 = arith.constant 36 : index
    %36 = memref.load %arg2[%c36] : memref<52xf32, #tpu.memory_space<smem>>
    %c37 = arith.constant 37 : index
    %37 = memref.load %arg2[%c37] : memref<52xf32, #tpu.memory_space<smem>>
    %c38 = arith.constant 38 : index
    %38 = memref.load %arg2[%c38] : memref<52xf32, #tpu.memory_space<smem>>
    %c39 = arith.constant 39 : index
    %39 = memref.load %arg2[%c39] : memref<52xf32, #tpu.memory_space<smem>>
    %c40 = arith.constant 40 : index
    %40 = memref.load %arg2[%c40] : memref<52xf32, #tpu.memory_space<smem>>
    %c41 = arith.constant 41 : index
    %41 = memref.load %arg2[%c41] : memref<52xf32, #tpu.memory_space<smem>>
    %c42 = arith.constant 42 : index
    %42 = memref.load %arg2[%c42] : memref<52xf32, #tpu.memory_space<smem>>
    %c43 = arith.constant 43 : index
    %43 = memref.load %arg2[%c43] : memref<52xf32, #tpu.memory_space<smem>>
    %c44 = arith.constant 44 : index
    %44 = memref.load %arg2[%c44] : memref<52xf32, #tpu.memory_space<smem>>
    %c45 = arith.constant 45 : index
    %45 = memref.load %arg2[%c45] : memref<52xf32, #tpu.memory_space<smem>>
    %c46 = arith.constant 46 : index
    %46 = memref.load %arg2[%c46] : memref<52xf32, #tpu.memory_space<smem>>
    %c47 = arith.constant 47 : index
    %47 = memref.load %arg2[%c47] : memref<52xf32, #tpu.memory_space<smem>>
    %c48 = arith.constant 48 : index
    %48 = memref.load %arg2[%c48] : memref<52xf32, #tpu.memory_space<smem>>
    %c49 = arith.constant 49 : index
    %49 = memref.load %arg2[%c49] : memref<52xf32, #tpu.memory_space<smem>>
    %c50 = arith.constant 50 : index
    %50 = memref.load %arg2[%c50] : memref<52xf32, #tpu.memory_space<smem>>
    %c51 = arith.constant 51 : index
    %51 = memref.load %arg2[%c51] : memref<52xf32, #tpu.memory_space<smem>>
    %c0_0 = arith.constant 0 : index
    %c0_1 = arith.constant 0 : index
    %c0_2 = arith.constant 0 : index
    %52 = vector.load %arg1[%c0_0, %c0_1, %c0_2] : memref<2x8x128xf32, #tpu.memory_space<vmem>>, vector<1x8x128xf32>
    %53 = vector.shape_cast %52 : vector<1x8x128xf32> to vector<8x128xf32>
    %c1_3 = arith.constant 1 : index
    %c0_4 = arith.constant 0 : index
    %c0_5 = arith.constant 0 : index
    %54 = vector.load %arg1[%c1_3, %c0_4, %c0_5] : memref<2x8x128xf32, #tpu.memory_space<vmem>>, vector<1x8x128xf32>
    %55 = vector.shape_cast %54 : vector<1x8x128xf32> to vector<8x128xf32>
    %56 = vector.broadcast %0 : f32 to vector<8x128xf32>
    %57 = arith.mulf %53, %56 : vector<8x128xf32>
    %58 = vector.broadcast %1 : f32 to vector<8x128xf32>
    %59 = arith.mulf %55, %58 : vector<8x128xf32>
    %60 = arith.addf %57, %59 : vector<8x128xf32>
    %61 = vector.broadcast %20 : f32 to vector<8x128xf32>
    %62 = arith.addf %60, %61 : vector<8x128xf32>
    %cst = arith.constant 0.000000e+00 : f32
    %63 = vector.broadcast %cst : f32 to vector<8x128xf32>
    %64 = arith.maximumf %62, %63 : vector<8x128xf32>
    %65 = vector.broadcast %2 : f32 to vector<8x128xf32>
    %66 = arith.mulf %53, %65 : vector<8x128xf32>
    %67 = vector.broadcast %3 : f32 to vector<8x128xf32>
    %68 = arith.mulf %55, %67 : vector<8x128xf32>
    %69 = arith.addf %66, %68 : vector<8x128xf32>
    %70 = vector.broadcast %21 : f32 to vector<8x128xf32>
    %71 = arith.addf %69, %70 : vector<8x128xf32>
    %cst_6 = arith.constant 0.000000e+00 : f32
    %72 = vector.broadcast %cst_6 : f32 to vector<8x128xf32>
    %73 = arith.maximumf %71, %72 : vector<8x128xf32>
    %74 = vector.broadcast %4 : f32 to vector<8x128xf32>
    %75 = arith.mulf %53, %74 : vector<8x128xf32>
    %76 = vector.broadcast %5 : f32 to vector<8x128xf32>
    %77 = arith.mulf %55, %76 : vector<8x128xf32>
    %78 = arith.addf %75, %77 : vector<8x128xf32>
    %79 = vector.broadcast %22 : f32 to vector<8x128xf32>
    %80 = arith.addf %78, %79 : vector<8x128xf32>
    %cst_7 = arith.constant 0.000000e+00 : f32
    %81 = vector.broadcast %cst_7 : f32 to vector<8x128xf32>
    %82 = arith.maximumf %80, %81 : vector<8x128xf32>
    %83 = vector.broadcast %6 : f32 to vector<8x128xf32>
    %84 = arith.mulf %53, %83 : vector<8x128xf32>
    %85 = vector.broadcast %7 : f32 to vector<8x128xf32>
    %86 = arith.mulf %55, %85 : vector<8x128xf32>
    %87 = arith.addf %84, %86 : vector<8x128xf32>
    %88 = vector.broadcast %23 : f32 to vector<8x128xf32>
    %89 = arith.addf %87, %88 : vector<8x128xf32>
    %cst_8 = arith.constant 0.000000e+00 : f32
    %90 = vector.broadcast %cst_8 : f32 to vector<8x128xf32>
    %91 = arith.maximumf %89, %90 : vector<8x128xf32>
    %92 = vector.broadcast %8 : f32 to vector<8x128xf32>
    %93 = arith.mulf %53, %92 : vector<8x128xf32>
    %94 = vector.broadcast %9 : f32 to vector<8x128xf32>
    %95 = arith.mulf %55, %94 : vector<8x128xf32>
    %96 = arith.addf %93, %95 : vector<8x128xf32>
    %97 = vector.broadcast %24 : f32 to vector<8x128xf32>
    %98 = arith.addf %96, %97 : vector<8x128xf32>
    %cst_9 = arith.constant 0.000000e+00 : f32
    %99 = vector.broadcast %cst_9 : f32 to vector<8x128xf32>
    %100 = arith.maximumf %98, %99 : vector<8x128xf32>
    %101 = vector.broadcast %10 : f32 to vector<8x128xf32>
    %102 = arith.mulf %53, %101 : vector<8x128xf32>
    %103 = vector.broadcast %11 : f32 to vector<8x128xf32>
    %104 = arith.mulf %55, %103 : vector<8x128xf32>
    %105 = arith.addf %102, %104 : vector<8x128xf32>
    %106 = vector.broadcast %25 : f32 to vector<8x128xf32>
    %107 = arith.addf %105, %106 : vector<8x128xf32>
    %cst_10 = arith.constant 0.000000e+00 : f32
    %108 = vector.broadcast %cst_10 : f32 to vector<8x128xf32>
    %109 = arith.maximumf %107, %108 : vector<8x128xf32>
    %110 = vector.broadcast %12 : f32 to vector<8x128xf32>
    %111 = arith.mulf %53, %110 : vector<8x128xf32>
    %112 = vector.broadcast %13 : f32 to vector<8x128xf32>
    %113 = arith.mulf %55, %112 : vector<8x128xf32>
    %114 = arith.addf %111, %113 : vector<8x128xf32>
    %115 = vector.broadcast %26 : f32 to vector<8x128xf32>
    %116 = arith.addf %114, %115 : vector<8x128xf32>
    %cst_11 = arith.constant 0.000000e+00 : f32
    %117 = vector.broadcast %cst_11 : f32 to vector<8x128xf32>
    %118 = arith.maximumf %116, %117 : vector<8x128xf32>
    %119 = vector.broadcast %14 : f32 to vector<8x128xf32>
    %120 = arith.mulf %53, %119 : vector<8x128xf32>
    %121 = vector.broadcast %15 : f32 to vector<8x128xf32>
    %122 = arith.mulf %55, %121 : vector<8x128xf32>
    %123 = arith.addf %120, %122 : vector<8x128xf32>
    %124 = vector.broadcast %27 : f32 to vector<8x128xf32>
    %125 = arith.addf %123, %124 : vector<8x128xf32>
    %cst_12 = arith.constant 0.000000e+00 : f32
    %126 = vector.broadcast %cst_12 : f32 to vector<8x128xf32>
    %127 = arith.maximumf %125, %126 : vector<8x128xf32>
    %128 = vector.broadcast %16 : f32 to vector<8x128xf32>
    %129 = arith.mulf %53, %128 : vector<8x128xf32>
    %130 = vector.broadcast %17 : f32 to vector<8x128xf32>
    %131 = arith.mulf %55, %130 : vector<8x128xf32>
    %132 = arith.addf %129, %131 : vector<8x128xf32>
    %133 = vector.broadcast %28 : f32 to vector<8x128xf32>
    %134 = arith.addf %132, %133 : vector<8x128xf32>
    %cst_13 = arith.constant 0.000000e+00 : f32
    %135 = vector.broadcast %cst_13 : f32 to vector<8x128xf32>
    %136 = arith.maximumf %134, %135 : vector<8x128xf32>
    %137 = vector.broadcast %18 : f32 to vector<8x128xf32>
    %138 = arith.mulf %53, %137 : vector<8x128xf32>
    %139 = vector.broadcast %19 : f32 to vector<8x128xf32>
    %140 = arith.mulf %55, %139 : vector<8x128xf32>
    %141 = arith.addf %138, %140 : vector<8x128xf32>
    %142 = vector.broadcast %29 : f32 to vector<8x128xf32>
    %143 = arith.addf %141, %142 : vector<8x128xf32>
    %cst_14 = arith.constant 0.000000e+00 : f32
    %144 = vector.broadcast %cst_14 : f32 to vector<8x128xf32>
    %145 = arith.maximumf %143, %144 : vector<8x128xf32>
    %146 = vector.broadcast %30 : f32 to vector<8x128xf32>
    %147 = arith.mulf %64, %146 : vector<8x128xf32>
    %148 = vector.broadcast %31 : f32 to vector<8x128xf32>
    %149 = arith.mulf %73, %148 : vector<8x128xf32>
    %150 = arith.addf %147, %149 : vector<8x128xf32>
    %151 = vector.broadcast %32 : f32 to vector<8x128xf32>
    %152 = arith.mulf %82, %151 : vector<8x128xf32>
    %153 = arith.addf %150, %152 : vector<8x128xf32>
    %154 = vector.broadcast %33 : f32 to vector<8x128xf32>
    %155 = arith.mulf %91, %154 : vector<8x128xf32>
    %156 = arith.addf %153, %155 : vector<8x128xf32>
    %157 = vector.broadcast %34 : f32 to vector<8x128xf32>
    %158 = arith.mulf %100, %157 : vector<8x128xf32>
    %159 = arith.addf %156, %158 : vector<8x128xf32>
    %160 = vector.broadcast %35 : f32 to vector<8x128xf32>
    %161 = arith.mulf %109, %160 : vector<8x128xf32>
    %162 = arith.addf %159, %161 : vector<8x128xf32>
    %163 = vector.broadcast %36 : f32 to vector<8x128xf32>
    %164 = arith.mulf %118, %163 : vector<8x128xf32>
    %165 = arith.addf %162, %164 : vector<8x128xf32>
    %166 = vector.broadcast %37 : f32 to vector<8x128xf32>
    %167 = arith.mulf %127, %166 : vector<8x128xf32>
    %168 = arith.addf %165, %167 : vector<8x128xf32>
    %169 = vector.broadcast %38 : f32 to vector<8x128xf32>
    %170 = arith.mulf %136, %169 : vector<8x128xf32>
    %171 = arith.addf %168, %170 : vector<8x128xf32>
    %172 = vector.broadcast %39 : f32 to vector<8x128xf32>
    %173 = arith.mulf %145, %172 : vector<8x128xf32>
    %174 = arith.addf %171, %173 : vector<8x128xf32>
    %175 = vector.broadcast %50 : f32 to vector<8x128xf32>
    %176 = arith.addf %174, %175 : vector<8x128xf32>
    %c0_15 = arith.constant 0 : index
    %c0_16 = arith.constant 0 : index
    %c0_17 = arith.constant 0 : index
    %177 = vector.load %arg3[%c0_15, %c0_16, %c0_17] : memref<2x8x128xf32, #tpu.memory_space<vmem>>, vector<1x8x128xf32>
    %178 = vector.shape_cast %177 : vector<1x8x128xf32> to vector<8x128xf32>
    %179 = vector.shape_cast %176 : vector<8x128xf32> to vector<1x8x128xf32>
    tpu.vector_store %arg3[%c0_15, %c0_16, %c0_17], %179 {strides = array<i32>} : memref<2x8x128xf32, #tpu.memory_space<vmem>>, vector<1x8x128xf32>,
    %180 = vector.broadcast %40 : f32 to vector<8x128xf32>
    %181 = arith.mulf %64, %180 : vector<8x128xf32>
    %182 = vector.broadcast %41 : f32 to vector<8x128xf32>
    %183 = arith.mulf %73, %182 : vector<8x128xf32>
    %184 = arith.addf %181, %183 : vector<8x128xf32>
    %185 = vector.broadcast %42 : f32 to vector<8x128xf32>
    %186 = arith.mulf %82, %185 : vector<8x128xf32>
    %187 = arith.addf %184, %186 : vector<8x128xf32>
    %188 = vector.broadcast %43 : f32 to vector<8x128xf32>
    %189 = arith.mulf %91, %188 : vector<8x128xf32>
    %190 = arith.addf %187, %189 : vector<8x128xf32>
    %191 = vector.broadcast %44 : f32 to vector<8x128xf32>
    %192 = arith.mulf %100, %191 : vector<8x128xf32>
    %193 = arith.addf %190, %192 : vector<8x128xf32>
    %194 = vector.broadcast %45 : f32 to vector<8x128xf32>
    %195 = arith.mulf %109, %194 : vector<8x128xf32>
    %196 = arith.addf %193, %195 : vector<8x128xf32>
    %197 = vector.broadcast %46 : f32 to vector<8x128xf32>
    %198 = arith.mulf %118, %197 : vector<8x128xf32>
    %199 = arith.addf %196, %198 : vector<8x128xf32>
    %200 = vector.broadcast %47 : f32 to vector<8x128xf32>
    %201 = arith.mulf %127, %200 : vector<8x128xf32>
    %202 = arith.addf %199, %201 : vector<8x128xf32>
    %203 = vector.broadcast %48 : f32 to vector<8x128xf32>
    %204 = arith.mulf %136, %203 : vector<8x128xf32>
    %205 = arith.addf %202, %204 : vector<8x128xf32>
    %206 = vector.broadcast %49 : f32 to vector<8x128xf32>
    %207 = arith.mulf %145, %206 : vector<8x128xf32>
    %208 = arith.addf %205, %207 : vector<8x128xf32>
    %209 = vector.broadcast %51 : f32 to vector<8x128xf32>
    %210 = arith.addf %208, %209 : vector<8x128xf32>
    %c1_18 = arith.constant 1 : index
    %c0_19 = arith.constant 0 : index
    %c0_20 = arith.constant 0 : index
    %211 = vector.load %arg3[%c1_18, %c0_19, %c0_20] : memref<2x8x128xf32, #tpu.memory_space<vmem>>, vector<1x8x128xf32>
    %212 = vector.shape_cast %211 : vector<1x8x128xf32> to vector<8x128xf32>
    %213 = vector.shape_cast %210 : vector<8x128xf32> to vector<1x8x128xf32>
    tpu.vector_store %arg3[%c1_18, %c0_19, %c0_20], %213 {strides = array<i32>} : memref<2x8x128xf32, #tpu.memory_space<vmem>>, vector<1x8x128xf32>,
    return
  }
  func.func @transform_0(%arg0: i32) -> (i32, i32, i32) {
    %c0_i32 = arith.constant 0 : i32
    %c0_i32_0 = arith.constant 0 : i32
    %c0_i32_1 = arith.constant 0 : i32
    return %c0_i32, %arg0, %c0_i32_0 : i32, i32, i32
  }
  func.func @transform_1(%arg0: i32) -> i32 {
    %c0_i32 = arith.constant 0 : i32
    %c0_i32_0 = arith.constant 0 : i32
    return %c0_i32 : i32
  }
  func.func @transform_2(%arg0: i32) -> (i32, i32, i32) {
    %c0_i32 = arith.constant 0 : i32
    %c0_i32_0 = arith.constant 0 : i32
    %c0_i32_1 = arith.constant 0 : i32
    return %c0_i32, %arg0, %c0_i32_0 : i32, i32, i32
  }
}

</mosaic_0001>

<bundles_post_ra>
// kernel: net_forward.1
= control target key start
LH: loop header
LB: loop body
LE: loop exit
PB: predicated region body
PF: predicated region fallthrough
CT: control target
= control target key end

     0   :  { %7 = vsyncpa [#allocation3], 0  ;;  %s297_s12 = smov [#allocation2]   ;;  %s524_s0 = inlined_call_operand.vmem [shape: f32[2,8,128], index: 0, kind: input, shape index: {}]   ;;  %s525_s1 = inlined_call_operand.vmem [shape: f32[52], index: 1, kind: input, shape index: {}]   ;;  %s526_s2 = inlined_call_operand.vmem [shape: f32[2,8,128], index: 2, kind: output, shape index: {}]  }
   0x1   :  { %s15_s11 = sshll.u32 %s525_s1, 4  ;;  %s16_s11 = int_to_ptr.vmem [resolvable:$true] %s15_s11 }
   0x2   :  { %18 = dma.vmem_to_smem %s16_s11, 16, %s297_s12, [#allocation3]  }
   0x3   :  { %295 = dma.done.wait [#allocation3], 16  }
   0x4   :  { %296 = vsyncadd [#allocation3], 4294967280 }
   0x5   :  { %23 = sfence }
   0x6   :  { %s316_s13 = sld [smem:[#allocation2]]  ;;  %v355_v0 = vld [vmem:[%s524_s0] sm:$0xff]  ;;  %v360_v1 = vld [vmem:[%s524_s0 + $0x8] sm:$0xff] }
   0x7   :  { %s318_s14 = sld [smem:[#allocation2 + $0x1]] }
   0x8   :  { %s320_s15 = sld [smem:[#allocation2 + $0x2]] }
   0x9   :  { %s322_s16 = sld [smem:[#allocation2 + $0x3]] }
   0xa   :  { %s324_s17 = sld [smem:[#allocation2 + $0x4]] }
   0xb   :  { %s326_s18 = sld [smem:[#allocation2 + $0x5]] }
   0xc   :  { %s328_s1 = sld [smem:[#allocation2 + $0x6]]  ;;  %v79_v2 = vstv %s316_s13 }
   0xd   :  { %s330_s19 = sld [smem:[#allocation2 + $0x7]]  ;;  %v81_v3 = vstv %s318_s14  ;;  %v80_v12 = vmul.f32 %v79_v2, %v355_v0 }
   0xe   :  { %s332_s20 = sld [smem:[#allocation2 + $0x8]]  ;;  %v87_v4 = vstv %s320_s15  ;;  %v82_v13 = vmul.f32 %v360_v1, %v81_v3 }
   0xf   :  { %s334_s21 = sld [smem:[#allocation2 + $0x9]]  ;;  %v89_v5 = vstv %s322_s16  ;;  %v88_v14 = vmul.f32 %v87_v4, %v355_v0 }
  0x10   :  { %s336_s22 = sld [smem:[#allocation2 + $0xa]]  ;;  %v95_v6 = vstv %s324_s17  ;;  %v90_v15 = vmul.f32 %v360_v1, %v89_v5  ;;  %v83_v25 = vadd.f32 %v82_v13, %v80_v12 }
  0x11   :  { %s338_s23 = sld [smem:[#allocation2 + $0xb]]  ;;  %v97_v7 = vstv %s326_s18  ;;  %v96_v16 = vmul.f32 %v95_v6, %v355_v0 }
  0x12   :  { %s340_s24 = sld [smem:[#allocation2 + $0xc]]  ;;  %v103_v8 = vstv %s328_s1  ;;  %v98_v17 = vmul.f32 %v360_v1, %v97_v7  ;;  %v91_v26 = vadd.f32 %v90_v15, %v88_v14 }
  0x13   :  { %s342_s25 = sld [smem:[#allocation2 + $0xd]]  ;;  %v105_v9 = vstv %s330_s19  ;;  %v104_v18 = vmul.f32 %v103_v8, %v355_v0 }
  0x14   :  { %s344_s26 = sld [smem:[#allocation2 + $0xe]]  ;;  %v111_v10 = vstv %s332_s20  ;;  %v106_v19 = vmul.f32 %v360_v1, %v105_v9  ;;  %v99_v29 = vadd.f32 %v98_v17, %v96_v16 }
  0x15   :  { %s346_s27 = sld [smem:[#allocation2 + $0xf]]  ;;  %v113_v11 = vstv %s334_s21  ;;  %v112_v20 = vmul.f32 %v111_v10, %v355_v0 }
  0x16   :  { %s348_s28 = sld [smem:[#allocation2 + $0x10]]  ;;  %v114_v21 = vmul.f32 %v360_v1, %v113_v11  ;;  %v119_v22 = vstv %s336_s22  ;;  %v107_v30 = vadd.f32 %v106_v19, %v104_v18 }
  0x17   :  { %s350_s29 = sld [smem:[#allocation2 + $0x11]]  ;;  %v121_v23 = vstv %s338_s23  ;;  %v120_v31 = vmul.f32 %v119_v22, %v355_v0 }
  0x18   :  { %s362_s6 = sld [smem:[#allocation2 + $0x12]]  ;;  %v127_v24 = vstv %s340_s24  ;;  %v115_v33 = vadd.f32 %v114_v21, %v112_v20  ;;  %v122_v34 = vmul.f32 %v360_v1, %v121_v23 }
  0x19   :  { %s368_s7 = sld [smem:[#allocation2 + $0x13]]  ;;  %v129_v27 = vstv %s342_s25  ;;  %v128_v35 = vmul.f32 %v127_v24, %v355_v0 }
  0x1a   :  { %s374_s8 = sld [smem:[#allocation2 + $0x14]]  ;;  %v130_v37 = vmul.f32 %v360_v1, %v129_v27  ;;  %v135_v38 = vstv %s344_s26  ;;  %v123_v49 = vadd.f32 %v122_v34, %v120_v31 }
  0x1b   :  { %s378_s0 = sld [smem:[#allocation2 + $0x15]]  ;;  %v137_v39 = vstv %s346_s27  ;;  %v136_v50 = vmul.f32 %v135_v38, %v355_v0 }
  0x1c   :  { %s384_s9 = sld [smem:[#allocation2 + $0x16]]  ;;  %v143_v42 = vstv %s348_s28  ;;  %v138_v51 = vmul.f32 %v360_v1, %v137_v39  ;;  %v131_v61 = vadd.f32 %v130_v37, %v128_v35 }
  0x1d   :  { %s390_s10 = sld [smem:[#allocation2 + $0x17]]  ;;  %v145_v43 = vstv %s350_s29  ;;  %v144_v54 = vmul.f32 %v143_v42, %v355_v0 }
  0x1e   :  { %s395_s11 = sld [smem:[#allocation2 + $0x18]]  ;;  %v151_v46 = vstv %s362_s6  ;;  %v146_v55 = vmul.f32 %v360_v1, %v145_v43  ;;  %v139_v3 = vadd.f32 %v138_v51, %v136_v50 }
  0x1f   :  { %s399_s12 = sld [smem:[#allocation2 + $0x19]]  ;;  %v153_v47 = vstv %s368_s7  ;;  %v152_v58 = vmul.f32 %v151_v46, %v355_v0 }
  0x20   :  { %s402_s13 = sld [smem:[#allocation2 + $0x1a]]  ;;  %v84_v28 = vstv %s374_s8  ;;  %v154_v59 = vmul.f32 %v360_v1, %v153_v47  ;;  %v147_v4 = vadd.f32 %v146_v55, %v144_v54 }
  0x21   :  { %s406_s14 = sld [smem:[#allocation2 + $0x1b]]  ;;  %v92_v32 = vstv %s378_s0  ;;  %v419_v40 = vadd.f32 %v84_v28, %v83_v25 }
  0x22   :  { %s411_s15 = sld [smem:[#allocation2 + $0x1c]]  ;;  %v100_v36 = vstv %s384_s9  ;;  %v426_v44 = vadd.f32 %v92_v32, %v91_v26  ;;  %v155_v7 = vadd.f32 %v154_v59, %v152_v58 }
  0x23   :  { %s417_s16 = sld [smem:[#allocation2 + $0x1d]]  ;;  %v108_v41 = vstv %s390_s10  ;;  %v433_v48 = vadd.f32 %v100_v36, %v99_v29  ;;  %v86_v56 = vmax.f32 %v419_v40, 0.0 }
  0x24   :  { %s424_s17 = sld [smem:[#allocation2 + $0x1e]]  ;;  %v116_v45 = vstv %s395_s11  ;;  %v439_v52 = vadd.f32 %v108_v41, %v107_v30  ;;  %v94_v60 = vmax.f32 %v426_v44, 0.0 }
  0x25   :  { %s431_s18 = sld [smem:[#allocation2 + $0x1f]]  ;;  %v124_v53 = vstv %s399_s12  ;;  %v447_v57 = vadd.f32 %v116_v45, %v115_v33  ;;  %v102_v62 = vmax.f32 %v433_v48, 0.0 }
  0x26   :  { %s437_s1 = sld [smem:[#allocation2 + $0x20]]  ;;  %v457_v63 = vadd.f32 %v124_v53, %v123_v49  ;;  %v132_v2 = vstv %s402_s13  ;;  %v110_v0 = vmax.f32 %v439_v52, 0.0 }
  0x27   :  { %s444_s19 = sld [smem:[#allocation2 + $0x21]]  ;;  %v140_v1 = vstv %s406_s14  ;;  %v118_v6 = vmax.f32 %v447_v57, 0.0  ;;  %v471_v10 = vadd.f32 %v132_v2, %v131_v61 }
  0x28   :  { %s451_s20 = sld [smem:[#allocation2 + $0x22]]  ;;  %v148_v11 = vstv %s411_s15  ;;  %v126_v14 = vmax.f32 %v457_v63, 0.0  ;;  %v478_v15 = vadd.f32 %v140_v1, %v139_v3 }
  0x29   :  { %s454_s21 = sld [smem:[#allocation2 + $0x23]]  ;;  %v156_v18 = vstv %s417_s16  ;;  %v483_v22 = vadd.f32 %v148_v11, %v147_v4  ;;  %v134_v24 = vmax.f32 %v471_v10, 0.0 }
  0x2a   :  { %s460_s22 = sld [smem:[#allocation2 + $0x24]]  ;;  %v159_v5 = vstv %s424_s17  ;;  %v157_v27 = vadd.f32 %v156_v18, %v155_v7  ;;  %v142_v29 = vmax.f32 %v478_v15, 0.0 }
  0x2b   :  { %s465_s23 = sld [smem:[#allocation2 + $0x25]]  ;;  %v160_v8 = vmul.f32 %v159_v5, %v86_v56  ;;  %v161_v9 = vstv %s431_s18  ;;  %v150_v32 = vmax.f32 %v483_v22, 0.0 }
  0x2c   :  { %s469_s24 = sld [smem:[#allocation2 + $0x26]]  ;;  %v162_v12 = vmul.f32 %v161_v9, %v94_v60  ;;  %v164_v13 = vstv %s437_s1  ;;  %v158_v38 = vmax.f32 %v157_v27, 0.0 }
  0x2d   :  { %s475_s25 = sld [smem:[#allocation2 + $0x27]]  ;;  %v165_v16 = vmul.f32 %v164_v13, %v102_v62  ;;  %v167_v17 = vstv %s444_s19 }
  0x2e   :  { %s268_s26 = sld [smem:[#allocation2 + $0x28]]  ;;  %v163_v19 = vadd.f32 %v162_v12, %v160_v8  ;;  %v168_v20 = vmul.f32 %v167_v17, %v110_v0  ;;  %v170_v21 = vstv %s451_s20 }
  0x2f   :  { %s269_s27 = sld [smem:[#allocation2 + $0x29]]  ;;  %v173_v23 = vstv %s454_s21  ;;  %v171_v26 = vmul.f32 %v170_v21, %v118_v6 }
  0x30   :  { %s486_s28 = sld [smem:[#allocation2 + $0x2a]]  ;;  %v166_v25 = vadd.f32 %v165_v16, %v163_v19  ;;  %v176_v28 = vstv %s460_s22  ;;  %v174_v31 = vmul.f32 %v173_v23, %v126_v14 }
  0x31   :  { %s491_s29 = sld [smem:[#allocation2 + $0x2b]]  ;;  %v179_v33 = vstv %s465_s23  ;;  %v177_v35 = vmul.f32 %v176_v28, %v134_v24 }
  0x32   :  { %s494_s30 = sld [smem:[#allocation2 + $0x2c]]  ;;  %v169_v30 = vadd.f32 %v168_v20, %v166_v25  ;;  %v182_v36 = vstv %s469_s24  ;;  %v180_v42 = vmul.f32 %v179_v33, %v142_v29 }
  0x33   :  { %s497_s3 = sld [smem:[#allocation2 + $0x2d]]  ;;  %v183_v45 = vmul.f32 %v182_v36, %v150_v32  ;;  %v185_v46 = vstv %s475_s25 }
  0x34   :  { %s501_s4 = sld [smem:[#allocation2 + $0x2e]]  ;;  %v172_v34 = vadd.f32 %v171_v26, %v169_v30  ;;  %v191_v37 = vstv %s268_s26  ;;  %v186_v55 = vmul.f32 %v185_v46, %v158_v38 }
  0x35   :  { %s504_s5 = sld [smem:[#allocation2 + $0x2f]]  ;;  %v192_v39 = vmul.f32 %v191_v37, %v86_v56  ;;  %v193_v40 = vstv %s269_s27 }
  0x36   :  { %v175_v41 = vadd.f32 %v174_v31, %v172_v34  ;;  %v194_v43 = vmul.f32 %v193_v40, %v94_v60  ;;  %v196_v44 = vstv %s486_s28  ;;  %s507_s6 = sld [smem:[#allocation2 + $0x30]] }
  0x37   :  { %v197_v47 = vmul.f32 %v196_v44, %v102_v62  ;;  %v199_v48 = vstv %s491_s29  ;;  %s278_s7 = sld [smem:[#allocation2 + $0x32]] }
  0x38   :  { %v178_v49 = vadd.f32 %v177_v35, %v175_v41  ;;  %v195_v50 = vadd.f32 %v194_v43, %v192_v39  ;;  %v200_v51 = vmul.f32 %v199_v48, %v110_v0  ;;  %v202_v52 = vstv %s494_s30  ;;  %s277_s8 = sld [smem:[#allocation2 + $0x31]] }
  0x39   :  { %v205_v53 = vstv %s497_s3  ;;  %v203_v58 = vmul.f32 %v202_v52, %v118_v6  ;;  %s279_s0 = sld [smem:[#allocation2 + $0x33]] }
  0x3a   :  { %v181_v54 = vadd.f32 %v180_v42, %v178_v49  ;;  %v198_v56 = vadd.f32 %v197_v47, %v195_v50  ;;  %v208_v59 = vstv %s501_s4  ;;  %v206_v62 = vmul.f32 %v205_v53, %v126_v14 }
  0x3b   :  { %v211_v63 = vstv %s504_s5  ;;  %v209_v4 = vmul.f32 %v208_v59, %v134_v24 }
  0x3c   :  { %v184_v60 = vadd.f32 %v183_v45, %v181_v54  ;;  %v201_v61 = vadd.f32 %v200_v51, %v198_v56  ;;  %v214_v0 = vstv %s507_s6  ;;  %v212_v8 = vmul.f32 %v211_v63, %v142_v29 }
  0x3d   :  { %v188_v3 = vstv %s278_s7  ;;  %v215_v6 = vmul.f32 %v214_v0, %v150_v32 }
  0x3e   :  { %v187_v2 = vadd.f32 %v186_v55, %v184_v60  ;;  %v204_v1 = vadd.f32 %v203_v58, %v201_v61  ;;  %v217_v9 = vstv %s277_s8 }
  0x3f   :  { %v218_v11 = vmul.f32 %v217_v9, %v158_v38  ;;  %v220_v13 = vstv %s279_s0 }
  0x40   :  { %v189_v5 = vadd.f32 %v188_v3, %v187_v2  ;;  %v207_v7 = vadd.f32 %v206_v62, %v204_v1 }
  0x42   :  { %190 = vst [vmem:[%s526_s2] sm:$0xff] %v189_v5  ;;  %v210_v57 = vadd.f32 %v209_v4, %v207_v7 }
  0x44   :  { %v213_v10 = vadd.f32 %v212_v8, %v210_v57 }
  0x46   :  { %v216_v12 = vadd.f32 %v215_v6, %v213_v10 }
  0x48   :  { %v219_v14 = vadd.f32 %v218_v11, %v216_v12 }
  0x4a   :  { %v221_v15 = vadd.f32 %v220_v13, %v219_v14 }
  0x4c   :  { %281 = vst [vmem:[%s526_s2 + $0x8] sm:$0xff] %v221_v15 }
  0x4d   :  { %228 = vsyncpa [#allocation3], 1 }

</bundles_post_ra>
